<compile_context>
chip_gen: v7x
topology: tpu7x:2x2x1
jax: 0.10.0
libtpu: 0.0.40
codegen_flags: <defaults>
</compile_context>

<pallas_src>
import numpy as np
import jax
import jax.numpy as jnp
from jax.experimental import pallas as pl
from jax.experimental.pallas import tpu as pltpu

try:  # exact match to the PyTorch reference when scipy is available
    from scipy.sparse.csgraph import minimum_spanning_tree as _scipy_mst
except Exception:  # pragma: no cover
    _scipy_mst = None

# Deterministic "parameters" of the module (__init__ args).
C_PARAM = 1.0
R_PARAM = 0.5

# f32 matches the reference bit-for-bit; jnp.bfloat16 cuts kernel-1 HBM writes
# and the N^2 device->host transfer by ~2x but may reorder near-tied MST edges.
_SIMILARITY_DTYPE = jnp.float32

_MAX_LANE_TILE = 2048            # max minor-dim tile when N is large
_FULL_ROW_LIMIT = 4096           # below this, use full-row (lane-dense) blocks
_TARGET_BLOCK_BYTES = 2 * 1024 * 1024   # per-buffer block-size target (f32)


def _pad_dim(n):
    """Pad N so lane tiles are full rows or a clean 512/1024/2048 divisor."""
    n128 = ((max(int(n), 1) + 127) // 128) * 128
    if n128 <= _FULL_ROW_LIMIT:
        return n128                          # full-row blocks, no divisor games
    return ((n128 + 511) // 512) * 512       # guarantees a >=512 lane tile


def _choose_tiles(n_pad):
    """(row_tile, lane_tile) for the N^2 streaming kernel."""
    # Lane (minor) tile: full rows when small enough, else largest clean
    # divisor among 2048/1024/512 (guaranteed by _pad_dim).
    if n_pad <= _FULL_ROW_LIMIT:
        tn = n_pad
    else:
        tn = _MAX_LANE_TILE
        while n_pad % tn:
            tn //= 2
    # Row (sublane) tile: long DMA bursts, but (a) keep each block <= ~2 MiB so
    # the 3-buffer x 2-stage working set stays ~12 MiB (fits scoped VMEM on
    # every generation, incl. v7x's smaller budget), and (b) give the grid
    # >= 8 steps so v7x's two TensorCores each get a balanced slice.
    tm = 256
    while tm > 8 and tm * tn * 4 > _TARGET_BLOCK_BYTES:
        tm //= 2
    while tm > 64 and (n_pad % tm or (n_pad // tm) * (n_pad // tn) < 8):
        tm //= 2
    while n_pad % tm:
        tm //= 2
    return tm, tn


# ----------------------------------------------------------------------------
# Kernel 1: build gold / viol similarity matrices (elementwise, tiled N x N).
# Only the two tensors actually needed downstream are written to HBM.
# ----------------------------------------------------------------------------
def _build_gold_viol_kernel(C, r):
    add_eq = -C          # added to s when intents match   (== neq*C*r - eq*C, eq=1)
    add_ne = C * r       # added to s when intents differ  (== neq*C*r - eq*C, eq=0)

    def kernel(scores_ref, int_col_ref, int_row_ref, gold_ref, viol_ref):
        s = scores_ref[...]
        # (tm,1) == (1,tn) broadcasts directly; no materialized int32 tiles.
        eq = int_col_ref[...] == int_row_ref[...]
        gold_ref[...] = jnp.where(eq, -s, 0.0).astype(gold_ref.dtype)   # -s * eq
        v = s + jnp.where(eq, add_eq, add_ne)          # s + neq*C*r - eq*C
        viol_ref[...] = jnp.where(v > 0.0, -v, 0.0).astype(viol_ref.dtype)

    return kernel


def _build_gold_viol(scores_p, int_col, int_row, C, r, out_dtype):
    n_pad = scores_p.shape[0]
    tm, tn = _choose_tiles(n_pad)
    grid = (n_pad // tm, n_pad // tn)
    out = jax.ShapeDtypeStruct((n_pad, n_pad), out_dtype)
    return pl.pallas_call(
        _build_gold_viol_kernel(C, r),
        out_shape=(out, out),
        grid=grid,
        in_specs=[
            pl.BlockSpec((tm, tn), lambda i, j: (i, j)),
            # tiny (tm,1)/(1,tn) intent slabs -- negligible vs. the N^2 traffic
            pl.BlockSpec((tm, 1), lambda i, j: (i, 0)),
            pl.BlockSpec((1, tn), lambda i, j: (0, j)),
        ],
        out_specs=(pl.BlockSpec((tm, tn), lambda i, j: (i, j)),
                   pl.BlockSpec((tm, tn), lambda i, j: (i, j))),
        compiler_params=pltpu.CompilerParams(
            dimension_semantics=("parallel", "parallel"),
            vmem_limit_bytes=32 * 1024 * 1024),
    )(scores_p, int_col, int_row)


# ----------------------------------------------------------------------------
# Kernel 2: final loss from one packed (8, E) array of per-edge vectors.
#   row 0: scores at gold-tree edges   row 1: gold-edge mask (1.0 per edge)
#   row 2: scores at viol-tree edges   row 3: viol-edge mask (1.0 per edge)
#   row 4: viol-edge "equal intents" flag        rows 5..7: zero padding
# ----------------------------------------------------------------------------
def _loss_kernel(C, r):
    def kernel(edges_ref, loss_ref):
        gold_score = jnp.sum(edges_ref[0:1, :])   # sum(scores * gold_tree!=0)
        a = jnp.sum(edges_ref[1:2, :])            # count_nonzero(gold_tree)
        viol_score = jnp.sum(edges_ref[2:3, :])   # sum(scores * viol_tree!=0)
        nv = jnp.sum(edges_ref[3:4, :])           # count_nonzero(viol_tree)
        b = jnp.sum(edges_ref[4:5, :])            # viol edges w/ equal intents
        c = nv - b                                # viol edges w/ diff intents
        delta = a - b + c * r
        obj = C * delta + viol_score - gold_score
        loss_ref[0, 0] = jnp.where(delta > 0.0, jnp.maximum(0.0, obj), 0.0)

    return kernel


def _compute_loss_from_edges(packed, C, r):
    e = packed.shape[1]
    return pl.pallas_call(
        _loss_kernel(C, r),
        out_shape=jax.ShapeDtypeStruct((1, 1), jnp.float32),
        grid=(1,),
        in_specs=[pl.BlockSpec((8, e), lambda i: (0, 0))],
        out_specs=pl.BlockSpec(memory_space=pltpu.MemorySpace.SMEM),
        compiler_params=pltpu.CompilerParams(dimension_semantics=("arbitrary",)),
    )(packed)


# ----------------------------------------------------------------------------
# Host-side minimum spanning forest -> sparse edge lists only.
# ----------------------------------------------------------------------------
def _mst_edges(W):
    """Minimum spanning forest of a dense host matrix (0 == no edge).

    Returns sparse edge (row, col) index lists; the dense tree is never built
    on device.
    """
    if _scipy_mst is not None:
        t = _scipy_mst(W).tocoo()
        return (np.asarray(t.row, dtype=np.int64),
                np.asarray(t.col, dtype=np.int64))

    # TODO(synk): fallback vectorized Prim forest when scipy is unavailable; a
    # sequential union-find / Prim graph algorithm has no clean Pallas
    # equivalent (the PyTorch reference also runs this step on CPU via scipy).
    W = np.asarray(W, dtype=np.float64)
    n = W.shape[0]
    A = np.where(W != 0.0, W, np.inf)
    U = np.minimum(A, A.T)                     # undirected: min of both directions
    np.fill_diagonal(U, np.inf)
    visited = np.zeros(n, dtype=bool)
    rows, cols = [], []
    best_w = np.empty(n, dtype=np.float64)
    best_from = np.empty(n, dtype=np.int64)
    for start in range(n):
        if visited[start]:
            continue
        visited[start] = True
        best_w[:] = np.inf
        best_from[:] = -1
        upd = (~visited) & (U[start] < best_w)
        best_w[upd] = U[start][upd]
        best_from[upd] = start
        while True:
            cand = np.where(visited, np.inf, best_w)
            v = int(np.argmin(cand))
            if not np.isfinite(cand[v]):
                break
            u = int(best_from[v])
            visited[v] = True
            i, j = (u, v) if u < v else (v, u)
            rows.append(i)
            cols.append(j)
            upd = (~visited) & (U[v] < best_w)
            best_w[upd] = U[v][upd]
            best_from[upd] = v
    return (np.asarray(rows, dtype=np.int64), np.asarray(cols, dtype=np.int64))


# ----------------------------------------------------------------------------
# Full forward pass
# ----------------------------------------------------------------------------
def supervised_clustering_loss(pairwise_score_matrics, intents,
                               C=C_PARAM, r=R_PARAM,
                               similarity_dtype=_SIMILARITY_DTYPE):
    n = int(pairwise_score_matrics.shape[0])
    scores = jnp.asarray(pairwise_score_matrics, dtype=jnp.float32)
    intents_i = jnp.asarray(intents, dtype=jnp.int32)

    # Pad to lane/sublane-friendly extents. Padded rows / cols are sliced off
    # on host before the MST, so they never create edges. When N is already
    # aligned (common), the redundant N^2 padded copy is skipped entirely.
    n_pad = _pad_dim(n)
    if n_pad == n:
        scores_p = scores
        ints_p = intents_i
    else:
        # TODO(synk): for unaligned N, fold the pad/mask into kernel 1 via a
        # broadcasted_iota vs. an SMEM n scalar instead of this padded copy.
        scores_p = jnp.zeros((n_pad, n_pad), jnp.float32).at[:n, :n].set(scores)
        ints_p = jnp.full((n_pad,), -1, jnp.int32).at[:n].set(intents_i)

    gold_p, viol_p = _build_gold_viol(
        scores_p, ints_p.reshape(n_pad, 1), ints_p.reshape(1, n_pad),
        C, r, similarity_dtype)

    # Single batched device->host transfer feeding the host MST (a sequential
    # graph algorithm, run on CPU exactly as in the reference).
    gold_h, viol_h, intents_h = jax.device_get((gold_p, viol_p, intents_i))
    gold_np = np.asarray(gold_h[:n, :n], dtype=np.float32)
    viol_np = np.asarray(viol_h[:n, :n], dtype=np.float32)
    intents_h = np.asarray(intents_h)

    gi, gj = _mst_edges(gold_np)
    vi, vj = _mst_edges(viol_np)

    # Reconstruct the original pairwise scores at the tree-edge positions from
    # the gold/viol values already on host -- no extra device gathers/syncs.
    #   gold edge  (intents equal):   gold = -s            ->  s = -gold
    #   viol edge, intents equal:     viol = -(s - C)      ->  s = -viol + C
    #   viol edge, intents differ:    viol = -(s + C*r)    ->  s = -viol - C*r
    g_sc = (-gold_np[gi, gj]).astype(np.float32) if gi.size else np.zeros(0, np.float32)
    if vi.size:
        v_eq = (intents_h[vi] == intents_h[vj])
        v_base = -viol_np[vi, vj]
        v_sc = np.where(v_eq, v_base + C, v_base - C * r).astype(np.float32)
        v_eq = v_eq.astype(np.float32)
    else:
        v_sc = np.zeros(0, np.float32)
        v_eq = np.zeros(0, np.float32)

    # One packed (8, E) array -> single H2D transfer + single DMA for kernel 2.
    n_g, n_v = gi.size, vi.size
    e_pad = ((max(n_g, n_v, 1) + 127) // 128) * 128
    packed = np.zeros((8, e_pad), np.float32)
    packed[0, :n_g] = g_sc
    packed[1, :n_g] = 1.0
    packed[2, :n_v] = v_sc
    packed[3, :n_v] = 1.0
    packed[4, :n_v] = v_eq

    loss = _compute_loss_from_edges(jnp.asarray(packed), C, r)
    return loss.reshape(1)


if __name__ == "__main__":
    key = jax.random.PRNGKey(0)
    n = 384                                    # aligned N -> no padded copy
    k1, k2 = jax.random.split(key)
    raw = jax.random.uniform(k1, (n, n), dtype=jnp.float32, minval=-1.0, maxval=1.0)
    scores = (raw + raw.T) * 0.5               # symmetric pairwise similarity scores
    intents = jax.random.randint(k2, (n,), 0, 4, dtype=jnp.int32)

    loss = supervised_clustering_loss(scores, intents, C=C_PARAM, r=R_PARAM)
    jax.block_until_ready(loss)
    print("KERNEL_OK")
</pallas_src>

<mosaic_0001>
module attributes {stable_mosaic.version = 11 : i64} {
  func.func @kernel(%arg0: i32, %arg1: i32, %arg2: memref<64x384xf32, #tpu.memory_space<vmem>>, %arg3: memref<64x1xi32, #tpu.memory_space<vmem>>, %arg4: memref<1x384xi32, #tpu.memory_space<vmem>>, %arg5: memref<64x384xf32, #tpu.memory_space<vmem>>, %arg6: memref<64x384xf32, #tpu.memory_space<vmem>>) attributes {dimension_semantics = [#tpu.dimension_semantics<parallel>, #tpu.dimension_semantics<parallel>], iteration_bounds = array<i64: 6, 1>, scalar_prefetch = 0 : i64, scratch_operands = 0 : i64, tpu.core_type = #tpu.core_type<tc>, window_params = [{transform_indices = @transform_0, window_bounds = array<i64: 64, 384>}, {transform_indices = @transform_1, window_bounds = array<i64: 64, 1>}, {transform_indices = @transform_2, window_bounds = array<i64: 1, 384>}, {transform_indices = @transform_3, window_bounds = array<i64: 64, 384>}, {transform_indices = @transform_4, window_bounds = array<i64: 64, 384>}]} {
    %c0 = arith.constant 0 : index
    %c0_0 = arith.constant 0 : index
    %0 = vector.load %arg2[%c0, %c0_0] : memref<64x384xf32, #tpu.memory_space<vmem>>, vector<64x384xf32>
    %c0_1 = arith.constant 0 : index
    %c0_2 = arith.constant 0 : index
    %1 = vector.load %arg3[%c0_1, %c0_2] : memref<64x1xi32, #tpu.memory_space<vmem>>, vector<64x1xi32>
    %c0_3 = arith.constant 0 : index
    %c0_4 = arith.constant 0 : index
    %2 = vector.load %arg4[%c0_3, %c0_4] : memref<1x384xi32, #tpu.memory_space<vmem>>, vector<1x384xi32>
    %3 = vector.broadcast %1 : vector<64x1xi32> to vector<64x384xi32>
    %4 = vector.broadcast %2 : vector<1x384xi32> to vector<64x384xi32>
    %5 = arith.cmpi eq, %3, %4 : vector<64x384xi32>
    %cst = arith.constant 0.000000e+00 : f32
    %6 = vector.broadcast %cst : f32 to vector<64x384xf32>
    %7 = arith.subf %6, %0 : vector<64x384xf32>
    %cst_5 = arith.constant 0.000000e+00 : f32
    %8 = vector.broadcast %cst_5 : f32 to vector<64x384xf32>
    %9 = arith.select %5, %7, %8 : vector<64x384xi1>, vector<64x384xf32>
    %c0_6 = arith.constant 0 : index
    %c0_7 = arith.constant 0 : index
    %10 = vector.load %arg5[%c0_6, %c0_7] : memref<64x384xf32, #tpu.memory_space<vmem>>, vector<64x384xf32>
    tpu.vector_store %arg5[%c0_6, %c0_7], %9 {strides = array<i32>} : memref<64x384xf32, #tpu.memory_space<vmem>>, vector<64x384xf32>,
    %cst_8 = arith.constant -1.000000e+00 : f32
    %cst_9 = arith.constant 5.000000e-01 : f32
    %11 = vector.broadcast %cst_8 : f32 to vector<64x384xf32>
    %12 = vector.broadcast %cst_9 : f32 to vector<64x384xf32>
    %13 = arith.select %5, %11, %12 : vector<64x384xi1>, vector<64x384xf32>
    %14 = arith.addf %0, %13 : vector<64x384xf32>
    %cst_10 = arith.constant 0.000000e+00 : f32
    %15 = vector.broadcast %cst_10 : f32 to vector<64x384xf32>
    %16 = arith.cmpf ogt, %14, %15 : vector<64x384xf32>
    %cst_11 = arith.constant 0.000000e+00 : f32
    %17 = vector.broadcast %cst_11 : f32 to vector<64x384xf32>
    %18 = arith.subf %17, %14 : vector<64x384xf32>
    %cst_12 = arith.constant 0.000000e+00 : f32
    %19 = vector.broadcast %cst_12 : f32 to vector<64x384xf32>
    %20 = arith.select %16, %18, %19 : vector<64x384xi1>, vector<64x384xf32>
    %c0_13 = arith.constant 0 : index
    %c0_14 = arith.constant 0 : index
    %21 = vector.load %arg6[%c0_13, %c0_14] : memref<64x384xf32, #tpu.memory_space<vmem>>, vector<64x384xf32>
    tpu.vector_store %arg6[%c0_13, %c0_14], %20 {strides = array<i32>} : memref<64x384xf32, #tpu.memory_space<vmem>>, vector<64x384xf32>,
    return
  }
  func.func @transform_0(%arg0: i32, %arg1: i32) -> (i32, i32) {
    %c0_i32 = arith.constant 0 : i32
    return %arg0, %arg1 : i32, i32
  }
  func.func @transform_1(%arg0: i32, %arg1: i32) -> (i32, i32) {
    %c0_i32 = arith.constant 0 : i32
    %c0_i32_0 = arith.constant 0 : i32
    return %arg0, %c0_i32 : i32, i32
  }
  func.func @transform_2(%arg0: i32, %arg1: i32) -> (i32, i32) {
    %c0_i32 = arith.constant 0 : i32
    %c0_i32_0 = arith.constant 0 : i32
    return %c0_i32, %arg1 : i32, i32
  }
  func.func @transform_3(%arg0: i32, %arg1: i32) -> (i32, i32) {
    %c0_i32 = arith.constant 0 : i32
    return %arg0, %arg1 : i32, i32
  }
  func.func @transform_4(%arg0: i32, %arg1: i32) -> (i32, i32) {
    %c0_i32 = arith.constant 0 : i32
    return %arg0, %arg1 : i32, i32
  }
}

</mosaic_0001>

<bundles_post_ra>
// kernel: tpu_custom_call.1
= control target key start
LH: loop header
LB: loop body
LE: loop exit
PB: predicated region body
PF: predicated region fallthrough
CT: control target
= control target key end

     0   :  { %10 = vsyncpa [#allocation3], 0  ;;  %s1634_s0 = inlined_call_operand.hbm [shape: f32[384,384], index: 0, kind: input, shape index: {}]   ;;  %s1635_s1 = inlined_call_operand.vmem [shape: s32[384,1], index: 1, kind: input, shape index: {}]   ;;  %s1636_s2 = inlined_call_operand.vmem [shape: s32[1,384], index: 2, kind: input, shape index: {}]   ;;  %s1637_s3 = inlined_call_operand.hbm [shape: f32[384,384], index: 3, kind: output, shape index: {0}]   ;;  %s1638_s4 = inlined_call_operand.hbm [shape: f32[384,384], index: 4, kind: output, shape index: {1}]  }
   0x1   :  { %12 = vsyncpa [#allocation3 + $0x1], 0 }
   0x2   :  { %13 = vsyncpa [#allocation4], 0 }
   0x3   :  { %15 = vsyncpa [#allocation4 + $0x1], 0 }
   0x4   :  { %16 = vsyncpa [#allocation7], 0 }
   0x5   :  { %18 = vsyncpa [#allocation7 + $0x1], 0  ;;  %s1070_s15 = smov 0   ;;  %s1072_s16 = smov 0  }
   0x6   :  { %s1074_s17 = smov 0   ;;  %s1076_s18 = smov 0  }
   0x7   :  { %s1078_s19 = smov 0   ;;  %s1080_s20 = smov 0  }
   0x8 LB: > { %s791_s21 = sadd.s32 4294967295, %s1034_s20   ;;  %s792_s22 = sadd.s32 4294967294, %s1034_s20   ;;  %s1034_s20 = sphi %s1080_s20, %s24_s20   ;;  %s1030_s19 = sphi %s1078_s19, %s1652_s19   ;;  %s1026_s18 = sphi %s1076_s18, %s1651_s18   ;;  %s1022_s17 = sphi %s1074_s17, %s1650_s17   ;;  %s1018_s16 = sphi %s1072_s16, %s1649_s16   ;;  %s1014_s15 = sphi %s1070_s15, %s1648_s15  }
   0x9   : > { %s36_s23 = sadd.s32 1, %s1030_s19  ;;  %s45_s24 = sadd.s32 1, %s1022_s17 }
   0xa   : > { %p38_p0 = scmp.ge.s32.totalorder %s36_s23, 6  ;;  %p52_p1 = scmp.ne.s32.totalorder %s1022_s17, %s1018_s16 }
   0xb   : > { %p53_p2 = scmp.eq.s32.totalorder %s1034_s20, 0  ;;  %p58_p3 = scmp.ne.s32.totalorder %s1018_s16, %s1014_s15 }
   0xc   : > { %s1654_s23 = smov (%p38_p0, %s36_s23), 0  ;;  %p59_p5 = scmp.eq.s32.totalorder %s791_s21, 0 }
   0xd   : > { %p1111_p4 = por %p53_p2, %p52_p1  ;;  %s40_s26 = ssub.s32 %s1030_s19, %s1654_s23 }
   0xe   : > { %p136_p6 = scmp.eq.s32.totalorder %s791_s21, 5  ;;  %p43_p7 = scmp.eq.s32.totalorder %s40_s26, 0 }
   0xf   : > { %p1117_p8 = por %p59_p5, %p58_p3  ;;  %p142_p10 = scmp.eq.s32.totalorder %s792_s22, 5 }
  0x10   : > { %p1121_p9 = por %p136_p6, %p52_p1  ;;  %p832_p12 = scmp.lt.s32.totalorder %s1034_s20, 6 }
  0x11   : > { %s1126_s29 = scalar_select %p43_p7, %s1022_s17, %s45_s24  }
  0x12   : > { %s1642_s28 = scalar_select %p1121_p9, 1, 0 }
  0x13   : > { %p1128_p11 = por %p142_p10, %p58_p3  ;;  %s198_s5 = sand.u32 1, %s1022_s17  }
  0x14   : > { %s810_s6 = smul.u32 192, %s198_s5  ;;  %p1137_p13 = pnand %p832_p12, %p1111_p4 }
  0x15   : > { %s1643_s30 = scalar_select %p1128_p11, 1, 0 }
  0x16   : > { %s811_s7 = smul.u32 3072, %s1030_s19  ;;  %s202_s12 = scalar_lea.vmem [#allocation2], %s810_s6 }
  0x17   : > { %s212_s13 = sshll.u32 %s202_s12, 4  ;;  %s1149_s14 = scalar_lea.sflag [#allocation3], %s198_s5  ;;  %s1146_s13 = int_to_ptr.vmem [resolvable:$true] %s212_s13 }
  0x18   : > { %s1144_s11 = scalar_lea.hbm %s1634_s0, %s811_s7  ;;  %p892_p2 = pneg %p1137_p13 }
  0x19   : > { %s890_s21 = scalar_lea.hbm %s1144_s11, 3072  ;;  %s895_s25 = scalar_lea.hbm %s1634_s0, 18432 }
  0x1a   : > { %p891_p1 = scmp.ne.s32.totalorder %s1144_s11, %s890_s21  ;;  %p896_p5 = scmp.lt.u32.totalorder %s1144_s11, %s1634_s0 }
  0x1b   : > { %p897_p6 = scmp.lt.u32.totalorder %s895_s25, %s890_s21  ;;  %p899_p10 = scmp.lt.u32.totalorder %s890_s21, %s1144_s11 }
  0x1c   : > { %p893_p3 = pnand %p892_p2, %p891_p1 }
  0x1d   : > { %p898_p7 = por %p897_p6, %p896_p5 }
  0x1e   : > { %p894_p4 = pneg %p893_p3 }
  0x1f   : > { %p900_p12 = por %p899_p10, %p898_p7 }
  0x21   : > { %p901_p0 = pnand %p900_p12, %p894_p4 }
  0x23   : > { %904 = shalt.err (!%p901_p0)
}
  0x24   : > { %s905_s5 = scalar_lea.vmem %s1146_s13, 3072  ;;  %s1036_s7 = smov [#allocation2]  }
  0x25   : > { %p906_p1 = scmp.ne.s32.totalorder %s1146_s13, %s905_s5  ;;  %s910_s9 = sshll.u32 %s1036_s7, 4  ;;  %s911_s9 = int_to_ptr.vmem [resolvable:$false] %s910_s9 }
  0x26   : > { %s912_s10 = scalar_lea.vmem %s911_s9, 6144  ;;  %p913_p9 = scmp.lt.s32.totalorder %s1146_s13, %s911_s9 }
  0x27   : > { %p908_p3 = pnand %p906_p1, %p892_p2  ;;  %p914_p5 = scmp.lt.s32.totalorder %s912_s10, %s905_s5 }
  0x29   : > { %p909_p11 = pneg %p908_p3  ;;  %p915_p6 = por %p914_p5, %p913_p9 }
  0x2b   : > { %p916_p7 = pnand %p915_p6, %p909_p11 }
  0x2d   : > { %919 = shalt.err (!%p916_p7)
}
  0x2e   : > { %s1037_s12 = smov 384   ;;  %s1038_s21 = smov 24  }
  0x2f   : > { %824 = dma.hbm_to_vmem [thread:$0]  (!%p1137_p13), %s1144_s11, 3072, %s1146_s13, %s1149_s14, %s1037_s12, %s1037_s12, %s1038_s21  }
  0x30   : > { %p229_p0 = scmp.lt.s32.totalorder %s1034_s20, 7  ;;  %p1645_p2 = scmp.ge.s32.totalorder %s1034_s20, 1 }
  0x32   : > { %p230_p4 = pnand %p1645_p2, %p229_p0 }
  0x33   : > { %s1181_s22 = sand.u32 (!%p230_p4), 1, %s1018_s16  }
  0x34   : > { %233 = sbr.rel (%p230_p4) target bundleno = 275 (0x113), region = 32  ;;  %s236_s25 = scalar_lea.sflag (!%p230_p4), [#allocation3], %s1181_s22 }
  0x35   : > { %s1184_s24 = smul.u32 (!%p230_p4), 192, %s1181_s22 }
  0x37   : > { %s1188_s26 = scalar_lea.vmem (!%p230_p4), [#allocation2], %s1184_s24 }
  0x3b   : > { %1001 = dma.done.wait (%p1117_p8), %s236_s25, 3072  }
  0x3c   : > { %1003 = vsyncadd (%p1117_p8), %s236_s25, 4294964224  ;;  %s800_s8 = sshll.u32 %s1026_s18, 3  ;;  %v1039_v0 = vmov 0   ;;  %v352_v9 = vlaneseq  ;;  %v327_v11 = vld [vmem:[%s1636_s2] sm:$0x7]  ;;  %v1202_v12 = vld [vmem:[%s1188_s26 + $0x30] sm:$0xff] }
  0x3d   : > { %889 = vset.pattern.permute.xlu1 %v1039_v0  ;;  %888 = vset.pattern.permute.xlu0 %v1039_v0  ;;  %p281_p9 = scmp.lt.s32.totalorder %s800_s8, 47  ;;  %v1205_v13 = vld [vmem:[%s1188_s26 + $0x38] sm:$0xff]  ;;  %v1208_v14 = vld [vmem:[%s1188_s26 + $0x40] sm:$0xff]  ;;  %v1214_v17 = vld [vmem:[%s1188_s26 + $0x8] sm:$0xff]  ;;  %v394_v27 = vsub.f32 0.0, %v1202_v12  ;;  %s1309_s7 = scalar_lea.vmem [#allocation5], %s1184_s24 }
  0x3e   : > { %v353_v10 = vshrl.u32 %v352_v9, 7  ;;  %v1211_v16 = vld [vmem:[%s1188_s26] sm:$0xff]  ;;  %v1217_v18 = vld [vmem:[%s1188_s26 + $0x10] sm:$0xff]  ;;  %v1220_v20 = vld [vmem:[%s1188_s26 + $0x48] sm:$0xff]  ;;  %v395_v28 = vsub.f32 0.0, %v1205_v13  ;;  %v396_v29 = vsub.f32 0.0, %v1208_v14 }
  0x3f   : > { %s1656_s8 = smov (!%p281_p9, %s800_s8), 47  ;;  %v1223_v21 = vld [vmem:[%s1188_s26 + $0x50] sm:$0xff]  ;;  %v1226_v22 = vld [vmem:[%s1188_s26 + $0x58] sm:$0xff]  ;;  %v1232_v25 = vld [vmem:[%s1188_s26 + $0x20] sm:$0xff]  ;;  %v388_v34 = vsub.f32 0.0, %v1211_v16  ;;  %v389_v35 = vsub.f32 0.0, %v1214_v17 }
  0x40   : > { %s801_s11 = sshll.u32 %s1656_s8, 3  ;;  %v354_v15 = vsub.s32 0, %v353_v10  ;;  %v358_v19 = vsub.s32 1, %v353_v10  ;;  %v362_v23 = vsub.s32 2, %v353_v10  ;;  %v1229_v24 = vld [vmem:[%s1188_s26 + $0x18] sm:$0xff]  ;;  %v1235_v26 = vld [vmem:[%s1188_s26 + $0x28] sm:$0xff] }
  0x41   : > { %s284_s6 = scalar_lea.vmem %s1635_s1, %s801_s11  ;;  %v1241_v30 = vld [vmem:[%s1188_s26 + $0x78] sm:$0xff]  ;;  %v1244_v31 = vld [vmem:[%s1188_s26 + $0x80] sm:$0xff]  ;;  %v1247_v32 = vld [vmem:[%s1188_s26 + $0x88] sm:$0xff]  ;;  %v390_v36 = vsub.f32 0.0, %v1217_v18  ;;  %v397_v41 = vsub.f32 0.0, %v1220_v20  ;;  %v398_v42 = vsub.f32 0.0, %v1223_v21 }
  0x42   : > { %v321_v1 = vld [vmem:[%s284_s6 + $0x10] sm:$0xff]  ;;  %v319_v2 = vld [vmem:[%s284_s6] sm:$0xff]  ;;  %v322_v3 = vld [vmem:[%s284_s6 + $0x18] sm:$0xff]  ;;  %v1249_v33 = vrot.slane %v327_v11, %v354_v15  ;;  %v1263_v40 = vrot.slane %v327_v11, %v358_v19  ;;  %v399_v43 = vsub.f32 0.0, %v1226_v22  ;;  %v1277_v47 = vrot.slane %v327_v11, %v362_v23  ;;  %s1340_s9 = scalar_lea.vmem [#allocation6], %s1184_s24  ;;  %s813_s10 = smul.u32 3072, %s1026_s18 }
  0x43   : > { %335 = vperm.xlu1 %889, %v321_v1   ;;  %329 = vperm.xlu0 %888, %v319_v2   ;;  %v320_v4 = vld [vmem:[%s284_s6 + $0x8] sm:$0xff]  ;;  %v323_v6 = vld [vmem:[%s284_s6 + $0x20] sm:$0xff]  ;;  %v326_v7 = vld [vmem:[%s284_s6 + $0x38] sm:$0xff]  ;;  %v391_v48 = vsub.f32 0.0, %v1229_v24  ;;  %v392_v49 = vsub.f32 0.0, %v1232_v25  ;;  %v393_v50 = vsub.f32 0.0, %v1235_v26 }
  0x44   : > { %v324_v5 = vld [vmem:[%s284_s6 + $0x28] sm:$0xff]  ;;  %v325_v8 = vld [vmem:[%s284_s6 + $0x30] sm:$0xff]  ;;  %v1255_v37 = vld [vmem:[%s1188_s26 + $0x60] sm:$0xff]  ;;  %v403_v54 = vsub.f32 0.0, %v1241_v30  ;;  %v404_v55 = vsub.f32 0.0, %v1244_v31  ;;  %v405_v56 = vsub.f32 0.0, %v1247_v32  ;;  %s1515_s25 = scalar_lea.hbm %s1637_s3, %s813_s10 }
  0x45   : > { %v1258_v38 = vld [vmem:[%s1188_s26 + $0x68] sm:$0xff]  ;;  %v1261_v39 = vld [vmem:[%s1188_s26 + $0x70] sm:$0xff]  ;;  %v1275_v46 = vld [vmem:[%s1188_s26 + $0xb8] sm:$0xff]  ;;  %v400_v57 = vsub.f32 0.0, %v1255_v37  ;;  %s626_s12 = sshll.u32 %s1309_s7, 4  ;;  %p1646_p11 = scmp.ne.s32.totalorder %s1642_s28, 0  ;;  %s1517_s12 = int_to_ptr.vmem [resolvable:$true] %s626_s12 }
  0x46   : > { %v1269_v44 = vld [vmem:[%s1188_s26 + $0xa8] sm:$0xff]  ;;  %v1272_v45 = vld [vmem:[%s1188_s26 + $0xb0] sm:$0xff]  ;;  %v1286_v52 = vld [vmem:[%s1188_s26 + $0x98] sm:$0xff]  ;;  %v401_v58 = vsub.f32 0.0, %v1258_v38  ;;  %v402_v59 = vsub.f32 0.0, %v1261_v39  ;;  %v411_v0 = vsub.f32 0.0, %v1275_v46 }
  0x47   : > { %338 = vperm.xlu1 %889, %v322_v3   ;;  %332 = vperm.xlu0 %888, %v320_v4   ;;  %v1283_v51 = vld [vmem:[%s1188_s26 + $0x90] sm:$0xff]  ;;  %v1289_v53 = vld [vmem:[%s1188_s26 + $0xa0] sm:$0xff]  ;;  %v409_v60 = vsub.f32 0.0, %v1269_v44  ;;  %v410_v61 = vsub.f32 0.0, %v1272_v45  ;;  %v407_v2 = vsub.f32 0.0, %v1286_v52  ;;  %s605_s26 = scalar_lea.sflag [#allocation4], %s1181_s22 }
  0x48   : > { %v406_v1 = vsub.f32 0.0, %v1283_v51  ;;  %v408_v3 = vsub.f32 0.0, %v1289_v53  ;;  %s920_s8 = scalar_lea.vmem %s1517_s12, 3072  ;;  %s1041_s11 = smov [#allocation5]  }
  0x49   : > { %p921_p8 = scmp.ne.s32.totalorder %s1517_s12, %s920_s8  ;;  %s924_s13 = sshll.u32 %s1041_s11, 4  ;;  %s925_s13 = int_to_ptr.vmem [resolvable:$false] %s924_s13 }
  0x4a   : > { %s926_s14 = scalar_lea.vmem %s925_s13, 6144  ;;  %p927_p12 = scmp.lt.s32.totalorder %s1517_s12, %s925_s13 }
  0x4b   : > { %344 = vperm.xlu1 %889, %v324_v5   ;;  %341 = vperm.xlu0 %888, %v323_v6   ;;  %p922_p13 = pnand %p921_p8, %p1646_p11  ;;  %p928_p1 = scmp.lt.s32.totalorder %s926_s14, %s920_s8 }
  0x4d   : > { %p923_p10 = pneg %p922_p13  ;;  %p929_p3 = por %p928_p1, %p927_p12 }
  0x4f   : > { %350 = vperm.xlu1 %889, %v326_v7   ;;  %347 = vperm.xlu0 %888, %v325_v8   ;;  %v1040_v7 = vmov 0.5   ;;  %p930_p5 = pnand %p929_p3, %p923_p10 }
  0xc2   : > { %v336_v62 = vpop.permute.xlu1 %335  ;;  %v330_v63 = vpop.permute.xlu0 %329 }
  0xc3   : > { %vm370_vm0 = vcmp.eq.s32.totalorder %v336_v62, %v1249_v33  ;;  %vm371_vm1 = vcmp.eq.s32.totalorder %v336_v62, %v1263_v40  ;;  %vm372_vm2 = vcmp.eq.s32.totalorder %v336_v62, %v1277_v47  ;;  %vm364_vm3 = vcmp.eq.s32.totalorder %v330_v63, %v1249_v33 }
  0xc4   : > { %v418_v4 = vsel %vm370_vm0, %v394_v27, 0.0  ;;  %v419_v5 = vsel %vm371_vm1, %v395_v28, 0.0  ;;  %v420_v6 = vsel %vm372_vm2, %v396_v29, 0.0  ;;  %v466_v8 = vsel %vm370_vm0, -1.0, %v1040_v7 }
  0xc5   : > { %442 = vst [vmem:[%s1309_s7 + $0x30] sm:$0xff] %v418_v4  ;;  %443 = vst [vmem:[%s1309_s7 + $0x38] sm:$0xff] %v419_v5  ;;  %v467_v9 = vsel %vm371_vm1, -1.0, %v1040_v7  ;;  %v468_v10 = vsel %vm372_vm2, -1.0, %v1040_v7  ;;  %v490_v11 = vadd.f32 %v466_v8, %v1202_v12  ;;  %vm365_vm4 = vcmp.eq.s32.totalorder %v330_v63, %v1263_v40 }
  0xc6   : > { %444 = vst [vmem:[%s1309_s7 + $0x40] sm:$0xff] %v420_v6  ;;  %v491_v15 = vadd.f32 %v467_v9, %v1205_v13  ;;  %v492_v19 = vadd.f32 %v468_v10, %v1208_v14  ;;  %vm366_vm5 = vcmp.eq.s32.totalorder %v330_v63, %v1277_v47  ;;  %v412_v23 = vsel %vm364_vm3, %v388_v34, 0.0  ;;  %v339_v14 = vpop.permute.xlu1 %338 }
  0xc7   : > { %vm514_vm6 = vcmp.gt.f32.partialorder %v490_v11, 0.0  ;;  %v538_v27 = vsub.f32 0.0, %v490_v11  ;;  %v413_v28 = vsel %vm365_vm4, %v389_v35, 0.0  ;;  %v414_v12 = vsel %vm366_vm5, %v390_v36, 0.0  ;;  %436 = vst [vmem:[%s1309_s7] sm:$0xff] %v412_v23  ;;  %v333_v11 = vpop.permute.xlu0 %332 }
  0xc8   : > { %vm515_vm7 = vcmp.gt.f32.partialorder %v491_v15, 0.0  ;;  %vm516_vm8 = vcmp.gt.f32.partialorder %v492_v19, 0.0  ;;  %v539_v13 = vsub.f32 0.0, %v491_v15  ;;  %v540_v29 = vsub.f32 0.0, %v492_v19  ;;  %437 = vst [vmem:[%s1309_s7 + $0x8] sm:$0xff] %v413_v28  ;;  %438 = vst [vmem:[%s1309_s7 + $0x10] sm:$0xff] %v414_v12 }
  0xc9   : > { %v562_v62 = vsel %vm514_vm6, %v538_v27, 0.0  ;;  %v460_v34 = vsel %vm364_vm3, -1.0, %v1040_v7  ;;  %v461_v35 = vsel %vm365_vm4, -1.0, %v1040_v7  ;;  %v462_v36 = vsel %vm366_vm5, -1.0, %v1040_v7 }
  0xca   : > { %v563_v4 = vsel %vm515_vm7, %v539_v13, 0.0  ;;  %v564_v5 = vsel %vm516_vm8, %v540_v29, 0.0  ;;  %586 = vst [vmem:[%s1340_s9 + $0x30] sm:$0xff] %v562_v62  ;;  %v484_v6 = vadd.f32 %v460_v34, %v1211_v16  ;;  %v485_v8 = vadd.f32 %v461_v35, %v1214_v17 }
  0xcb   : > { %587 = vst [vmem:[%s1340_s9 + $0x38] sm:$0xff] %v563_v4  ;;  %588 = vst [vmem:[%s1340_s9 + $0x40] sm:$0xff] %v564_v5  ;;  %v486_v9 = vadd.f32 %v462_v36, %v1217_v18  ;;  %vm373_vm9 = vcmp.eq.s32.totalorder %v339_v14, %v1249_v33  ;;  %vm374_vm10 = vcmp.eq.s32.totalorder %v339_v14, %v1263_v40 }
  0xcc   : > { %vm375_vm11 = vcmp.eq.s32.totalorder %v339_v14, %v1277_v47  ;;  %vm508_vm12 = vcmp.gt.f32.partialorder %v484_v6, 0.0  ;;  %vm509_vm13 = vcmp.gt.f32.partialorder %v485_v8, 0.0  ;;  %v532_v63 = vsub.f32 0.0, %v484_v6 }
  0xcd   : > { %v533_v16 = vsub.f32 0.0, %v485_v8  ;;  %vm510_vm14 = vcmp.gt.f32.partialorder %v486_v9, 0.0  ;;  %v534_v17 = vsub.f32 0.0, %v486_v9  ;;  %v421_v18 = vsel %vm373_vm9, %v397_v41, 0.0 }
  0xce   : > { %v422_v10 = vsel %vm374_vm10, %v398_v42, 0.0  ;;  %v556_v15 = vsel %vm508_vm12, %v532_v63, 0.0  ;;  %v423_v23 = vsel %vm375_vm11, %v399_v43, 0.0  ;;  %445 = vst [vmem:[%s1309_s7 + $0x48] sm:$0xff] %v421_v18  ;;  %v469_v41 = vsel %vm373_vm9, -1.0, %v1040_v7 }
  0xcf   : > { %v557_v19 = vsel %vm509_vm13, %v533_v16, 0.0  ;;  %446 = vst [vmem:[%s1309_s7 + $0x50] sm:$0xff] %v422_v10  ;;  %v558_v27 = vsel %vm510_vm14, %v534_v17, 0.0  ;;  %580 = vst [vmem:[%s1340_s9] sm:$0xff] %v556_v15  ;;  %v470_v42 = vsel %vm374_vm10, -1.0, %v1040_v7  ;;  %v471_v28 = vsel %vm375_vm11, -1.0, %v1040_v7  ;;  %v342_v17 = vpop.permute.xlu0 %341 }
  0xd0   : > { %581 = vst [vmem:[%s1340_s9 + $0x8] sm:$0xff] %v557_v19  ;;  %447 = vst [vmem:[%s1309_s7 + $0x58] sm:$0xff] %v423_v23  ;;  %v493_v43 = vadd.f32 %v469_v41, %v1220_v20  ;;  %v494_v12 = vadd.f32 %v470_v42, %v1223_v21  ;;  %v495_v13 = vadd.f32 %v471_v28, %v1226_v22  ;;  %v345_v22 = vpop.permute.xlu1 %344 }
  0xd1   : > { %582 = vst [vmem:[%s1340_s9 + $0x10] sm:$0xff] %v558_v27  ;;  %vm367_vm15 = vcmp.eq.s32.totalorder %v333_v11, %v1249_v33  ;;  %vm368_vm0 = vcmp.eq.s32.totalorder %v333_v11, %v1263_v40  ;;  %vm369_vm2 = vcmp.eq.s32.totalorder %v333_v11, %v1277_v47  ;;  %vm379_vm5 = vcmp.eq.s32.totalorder %v345_v22, %v1249_v33 }
  0xd2   : > { %vm517_vm1 = vcmp.gt.f32.partialorder %v493_v43, 0.0  ;;  %v541_v29 = vsub.f32 0.0, %v493_v43  ;;  %v415_v14 = vsel %vm367_vm15, %v391_v48, 0.0  ;;  %vm518_vm3 = vcmp.gt.f32.partialorder %v494_v12, 0.0 }
  0xd3   : > { %vm519_vm4 = vcmp.gt.f32.partialorder %v495_v13, 0.0  ;;  %v542_v20 = vsub.f32 0.0, %v494_v12  ;;  %v543_v21 = vsub.f32 0.0, %v495_v13  ;;  %439 = vst [vmem:[%s1309_s7 + $0x18] sm:$0xff] %v415_v14  ;;  %v416_v34 = vsel %vm368_vm0, %v392_v49, 0.0 }
  0xd4   : > { %v565_v62 = vsel %vm517_vm1, %v541_v29, 0.0  ;;  %v417_v35 = vsel %vm369_vm2, %v393_v50, 0.0  ;;  %v463_v48 = vsel %vm367_vm15, -1.0, %v1040_v7  ;;  %440 = vst [vmem:[%s1309_s7 + $0x20] sm:$0xff] %v416_v34  ;;  %v464_v5 = vsel %vm368_vm0, -1.0, %v1040_v7  ;;  %v351_v27 = vpop.permute.xlu1 %350 }
  0xd5   : > { %v566_v36 = vsel %vm518_vm3, %v542_v20, 0.0  ;;  %v567_v4 = vsel %vm519_vm4, %v543_v21, 0.0  ;;  %589 = vst [vmem:[%s1340_s9 + $0x48] sm:$0xff] %v565_v62  ;;  %441 = vst [vmem:[%s1309_s7 + $0x28] sm:$0xff] %v417_v35  ;;  %v465_v49 = vsel %vm369_vm2, -1.0, %v1040_v7  ;;  %v487_v50 = vadd.f32 %v463_v48, %v1229_v24  ;;  %v348_v62 = vpop.permute.xlu0 %347 }
  0xd6   : > { %590 = vst [vmem:[%s1340_s9 + $0x50] sm:$0xff] %v566_v36  ;;  %591 = vst [vmem:[%s1340_s9 + $0x58] sm:$0xff] %v567_v4  ;;  %v488_v6 = vadd.f32 %v464_v5, %v1232_v25  ;;  %v489_v8 = vadd.f32 %v465_v49, %v1235_v26  ;;  %vm380_vm6 = vcmp.eq.s32.totalorder %v345_v22, %v1263_v40  ;;  %v427_v9 = vsel %vm379_vm5, %v403_v54, 0.0 }
  0xd7   : > { %vm381_vm7 = vcmp.eq.s32.totalorder %v345_v22, %v1277_v47  ;;  %v475_v63 = vsel %vm379_vm5, -1.0, %v1040_v7  ;;  %vm511_vm8 = vcmp.gt.f32.partialorder %v487_v50, 0.0  ;;  %v535_v24 = vsub.f32 0.0, %v487_v50  ;;  %451 = vst [vmem:[%s1309_s7 + $0x78] sm:$0xff] %v427_v9 }
  0xd8   : > { %vm512_vm9 = vcmp.gt.f32.partialorder %v488_v6, 0.0  ;;  %vm513_vm10 = vcmp.gt.f32.partialorder %v489_v8, 0.0  ;;  %v536_v25 = vsub.f32 0.0, %v488_v6  ;;  %v537_v26 = vsub.f32 0.0, %v489_v8 }
  0xd9   : > { %v428_v16 = vsel %vm380_vm6, %v404_v55, 0.0  ;;  %v429_v54 = vsel %vm381_vm7, %v405_v56, 0.0  ;;  %v559_v18 = vsel %vm511_vm8, %v535_v24, 0.0  ;;  %v476_v10 = vsel %vm380_vm6, -1.0, %v1040_v7 }
  0xda   : > { %452 = vst [vmem:[%s1309_s7 + $0x80] sm:$0xff] %v428_v16  ;;  %453 = vst [vmem:[%s1309_s7 + $0x88] sm:$0xff] %v429_v54  ;;  %v477_v11 = vsel %vm381_vm7, -1.0, %v1040_v7  ;;  %v499_v15 = vadd.f32 %v475_v63, %v1241_v30  ;;  %v560_v55 = vsel %vm512_vm9, %v536_v25, 0.0  ;;  %v561_v19 = vsel %vm513_vm10, %v537_v26, 0.0 }
  0xdb   : > { %583 = vst [vmem:[%s1340_s9 + $0x18] sm:$0xff] %v559_v18  ;;  %v500_v23 = vadd.f32 %v476_v10, %v1244_v31  ;;  %v501_v56 = vadd.f32 %v477_v11, %v1247_v32  ;;  %584 = vst [vmem:[%s1340_s9 + $0x20] sm:$0xff] %v560_v55  ;;  %vm376_vm12 = vcmp.eq.s32.totalorder %v342_v17, %v1249_v33 }
  0xdc   : > { %585 = vst [vmem:[%s1340_s9 + $0x28] sm:$0xff] %v561_v19  ;;  %vm523_vm11 = vcmp.gt.f32.partialorder %v499_v15, 0.0  ;;  %v547_v41 = vsub.f32 0.0, %v499_v15  ;;  %vm377_vm13 = vcmp.eq.s32.totalorder %v342_v17, %v1263_v40  ;;  %vm378_vm0 = vcmp.eq.s32.totalorder %v342_v17, %v1277_v47 }
  0xdd   : > { %vm524_vm14 = vcmp.gt.f32.partialorder %v500_v23, 0.0  ;;  %vm525_vm15 = vcmp.gt.f32.partialorder %v501_v56, 0.0  ;;  %v548_v30 = vsub.f32 0.0, %v500_v23  ;;  %v549_v31 = vsub.f32 0.0, %v501_v56 }
  0xde   : > { %v571_v32 = vsel %vm523_vm11, %v547_v41, 0.0  ;;  %v424_v42 = vsel %vm376_vm12, %v400_v57, 0.0  ;;  %v425_v28 = vsel %vm377_vm13, %v401_v58, 0.0  ;;  %v426_v13 = vsel %vm378_vm0, %v402_v59, 0.0 }
  0xdf   : > { %v572_v43 = vsel %vm524_vm14, %v548_v30, 0.0  ;;  %v573_v12 = vsel %vm525_vm15, %v549_v31, 0.0  ;;  %595 = vst [vmem:[%s1340_s9 + $0x78] sm:$0xff] %v571_v32  ;;  %448 = vst [vmem:[%s1309_s7 + $0x60] sm:$0xff] %v424_v42  ;;  %v472_v29 = vsel %vm376_vm12, -1.0, %v1040_v7  ;;  %v473_v57 = vsel %vm377_vm13, -1.0, %v1040_v7 }
  0xe0   : > { %449 = vst [vmem:[%s1309_s7 + $0x68] sm:$0xff] %v425_v28  ;;  %596 = vst [vmem:[%s1340_s9 + $0x80] sm:$0xff] %v572_v43  ;;  %v474_v58 = vsel %vm378_vm0, -1.0, %v1040_v7  ;;  %v496_v14 = vadd.f32 %v472_v29, %v1255_v37  ;;  %vm385_vm1 = vcmp.eq.s32.totalorder %v351_v27, %v1249_v33  ;;  %v497_v59 = vadd.f32 %v473_v57, %v1258_v38 }
  0xe1   : > { %597 = vst [vmem:[%s1340_s9 + $0x88] sm:$0xff] %v573_v12  ;;  %450 = vst [vmem:[%s1309_s7 + $0x70] sm:$0xff] %v426_v13  ;;  %v498_v20 = vadd.f32 %v474_v58, %v1261_v39  ;;  %vm386_vm2 = vcmp.eq.s32.totalorder %v351_v27, %v1263_v40  ;;  %vm387_vm3 = vcmp.eq.s32.totalorder %v351_v27, %v1277_v47  ;;  %v433_v22 = vsel %vm385_vm1, %v409_v60, 0.0 }
  0xe2   : > { %vm520_vm4 = vcmp.gt.f32.partialorder %v496_v14, 0.0  ;;  %v544_v21 = vsub.f32 0.0, %v496_v14  ;;  %v434_v37 = vsel %vm386_vm2, %v410_v61, 0.0  ;;  %vm521_vm5 = vcmp.gt.f32.partialorder %v497_v59, 0.0  ;;  %457 = vst [vmem:[%s1309_s7 + $0xa8] sm:$0xff] %v433_v22 }
  0xe3   : > { %vm522_vm6 = vcmp.gt.f32.partialorder %v498_v20, 0.0  ;;  %v545_v38 = vsub.f32 0.0, %v497_v59  ;;  %v546_v39 = vsub.f32 0.0, %v498_v20  ;;  %458 = vst [vmem:[%s1309_s7 + $0xb0] sm:$0xff] %v434_v37  ;;  %v435_v60 = vsel %vm387_vm3, %v411_v0, 0.0 }
  0xe4   : > { %v568_v34 = vsel %vm520_vm4, %v544_v21, 0.0  ;;  %v481_v61 = vsel %vm385_vm1, -1.0, %v1040_v7  ;;  %v482_v35 = vsel %vm386_vm2, -1.0, %v1040_v7  ;;  %459 = vst [vmem:[%s1309_s7 + $0xb8] sm:$0xff] %v435_v60  ;;  %v483_v4 = vsel %vm387_vm3, -1.0, %v1040_v7 }
  0xe5   : > { %v569_v48 = vsel %vm521_vm5, %v545_v38, 0.0  ;;  %v570_v36 = vsel %vm522_vm6, %v546_v39, 0.0  ;;  %592 = vst [vmem:[%s1340_s9 + $0x60] sm:$0xff] %v568_v34  ;;  %v505_v0 = vadd.f32 %v481_v61, %v1269_v44  ;;  %v506_v5 = vadd.f32 %v482_v35, %v1272_v45 }
  0xe6   : > { %593 = vst [vmem:[%s1340_s9 + $0x68] sm:$0xff] %v569_v48  ;;  %594 = vst [vmem:[%s1340_s9 + $0x70] sm:$0xff] %v570_v36  ;;  %v507_v49 = vadd.f32 %v483_v4, %v1275_v46  ;;  %vm382_vm7 = vcmp.eq.s32.totalorder %v348_v62, %v1249_v33  ;;  %vm383_vm8 = vcmp.eq.s32.totalorder %v348_v62, %v1263_v40 }
  0xe7   : > { %vm529_vm9 = vcmp.gt.f32.partialorder %v505_v0, 0.0  ;;  %v553_v50 = vsub.f32 0.0, %v505_v0  ;;  %vm384_vm10 = vcmp.eq.s32.totalorder %v348_v62, %v1277_v47  ;;  %v430_v44 = vsel %vm382_vm7, %v406_v1, 0.0 }
  0xe8   : > { %vm530_vm11 = vcmp.gt.f32.partialorder %v506_v5, 0.0  ;;  %vm531_vm12 = vcmp.gt.f32.partialorder %v507_v49, 0.0  ;;  %v554_v45 = vsub.f32 0.0, %v506_v5  ;;  %v555_v46 = vsub.f32 0.0, %v507_v49  ;;  %454 = vst [vmem:[%s1309_s7 + $0x90] sm:$0xff] %v430_v44 }
  0xe9   : > { %v577_v6 = vsel %vm529_vm9, %v553_v50, 0.0  ;;  %v431_v1 = vsel %vm383_vm8, %v407_v2, 0.0  ;;  %v432_v8 = vsel %vm384_vm10, %v408_v3, 0.0  ;;  %v478_v9 = vsel %vm382_vm7, -1.0, %v1040_v7 }
  0xea   : > { %v578_v63 = vsel %vm530_vm11, %v554_v45, 0.0  ;;  %v579_v24 = vsel %vm531_vm12, %v555_v46, 0.0  ;;  %601 = vst [vmem:[%s1340_s9 + $0xa8] sm:$0xff] %v577_v6  ;;  %455 = vst [vmem:[%s1309_s7 + $0x98] sm:$0xff] %v431_v1  ;;  %v479_v2 = vsel %vm383_vm8, -1.0, %v1040_v7  ;;  %v480_v3 = vsel %vm384_vm10, -1.0, %v1040_v7 }
  0xeb   : > { %456 = vst [vmem:[%s1309_s7 + $0xa0] sm:$0xff] %v432_v8  ;;  %602 = vst [vmem:[%s1340_s9 + $0xb0] sm:$0xff] %v578_v63  ;;  %v502_v33 = vadd.f32 %v478_v9, %v1283_v51  ;;  %v503_v25 = vadd.f32 %v479_v2, %v1286_v52  ;;  %v504_v26 = vadd.f32 %v480_v3, %v1289_v53 }
  0xec   : > { %603 = vst [vmem:[%s1340_s9 + $0xb8] sm:$0xff] %v579_v24 }
  0xed   : > { %933 = shalt.err (!%p930_p5)
}
  0xee   : > { %s934_s6 = scalar_lea.hbm %s1515_s25, 3072  ;;  %s938_s7 = scalar_lea.hbm %s1637_s3, 18432 }
  0xef   : > { %p935_p6 = scmp.ne.s32.totalorder %s1515_s25, %s934_s6  ;;  %p939_p2 = scmp.lt.u32.totalorder %s1515_s25, %s1637_s3 }
  0xf0   : > { %p940_p4 = scmp.lt.u32.totalorder %s938_s7, %s934_s6  ;;  %p942_p8 = scmp.lt.u32.totalorder %s934_s6, %s1515_s25 }
  0xf1   : > { %p936_p7 = pnand %p935_p6, %p1646_p11 }
  0xf2   : > { %p941_p9 = por %p940_p4, %p939_p2 }
  0xf3   : > { %p937_p0 = pneg %p936_p7 }
  0xf4   : > { %p943_p13 = por %p942_p8, %p941_p9 }
  0xf6   : > { %p944_p10 = pnand %p943_p13, %p937_p0 }
  0xf8   : > { %947 = shalt.err (!%p944_p10)
}
  0xf9   : > { %s1042_s8 = smov 384   ;;  %s1043_s11 = smov 24   ;;  %vm526_vm13 = vcmp.gt.f32.partialorder %v502_v33, 0.0  ;;  %vm527_vm14 = vcmp.gt.f32.partialorder %v503_v25, 0.0  ;;  %vm528_vm15 = vcmp.gt.f32.partialorder %v504_v26, 0.0  ;;  %v550_v40 = vsub.f32 0.0, %v502_v33 }
  0xfa   : > { %817 = dma.vmem_to_hbm [thread:$0]  (%p1646_p11), %s1517_s12, 3072, %s1515_s25, %s605_s26, %s1042_s8, %s1042_s8, %s1043_s11   ;;  %v551_v47 = vsub.f32 0.0, %v503_v25  ;;  %v552_v51 = vsub.f32 0.0, %v504_v26 }
  0xfb   : > { %s645_s13 = sshll.u32 %s1340_s9, 4  ;;  %v574_v52 = vsel %vm526_vm13, %v550_v40, 0.0  ;;  %s1578_s27 = scalar_lea.hbm %s1638_s4, %s813_s10  ;;  %s1580_s13 = int_to_ptr.vmem [resolvable:$true] %s645_s13 }
  0xfc   : > { %v575_v53 = vsel %vm527_vm14, %v551_v47, 0.0  ;;  %v576_v7 = vsel %vm528_vm15, %v552_v51, 0.0  ;;  %598 = vst [vmem:[%s1340_s9 + $0x90] sm:$0xff] %v574_v52  ;;  %s610_s12 = scalar_lea.sflag [#allocation7], %s1181_s22  ;;  %s948_s25 = scalar_lea.vmem %s1580_s13, 3072 }
  0xfd   : > { %599 = vst [vmem:[%s1340_s9 + $0x98] sm:$0xff] %v575_v53  ;;  %600 = vst [vmem:[%s1340_s9 + $0xa0] sm:$0xff] %v576_v7  ;;  %p949_p12 = scmp.ne.s32.totalorder %s1580_s13, %s948_s25  ;;  %s1044_s18 = smov [#allocation6]  }
  0xfe   : > { %s952_s26 = sshll.u32 %s1044_s18, 4  ;;  %s953_s26 = int_to_ptr.vmem [resolvable:$false] %s952_s26 }
  0xff   : > { %p950_p1 = pnand %p949_p12, %p1646_p11  ;;  %s954_s10 = scalar_lea.vmem %s953_s26, 6144 }
 0x100   : > { %p955_p5 = scmp.lt.s32.totalorder %s1580_s13, %s953_s26  ;;  %p956_p6 = scmp.lt.s32.totalorder %s954_s10, %s948_s25 }
 0x101   : > { %p951_p3 = pneg %p950_p1 }
 0x102   : > { %p957_p7 = por %p956_p6, %p955_p5 }
 0x104   : > { %p958_p0 = pnand %p957_p7, %p951_p3 }
 0x106   : > { %961 = shalt.err (!%p958_p0)
}
 0x107   : > { %s962_s9 = scalar_lea.hbm %s1578_s27, 3072  ;;  %s966_s21 = scalar_lea.hbm %s1638_s4, 18432 }
 0x108   : > { %p963_p2 = scmp.ne.s32.totalorder %s1578_s27, %s962_s9  ;;  %p967_p8 = scmp.lt.u32.totalorder %s1578_s27, %s1638_s4 }
 0x109   : > { %p968_p13 = scmp.lt.u32.totalorder %s966_s21, %s962_s9  ;;  %p970_p12 = scmp.lt.u32.totalorder %s962_s9, %s1578_s27 }
 0x10a   : > { %p964_p4 = pnand %p963_p2, %p1646_p11 }
 0x10b   : > { %p969_p10 = por %p968_p13, %p967_p8 }
 0x10c   : > { %p965_p9 = pneg %p964_p4 }
 0x10d   : > { %p971_p1 = por %p970_p12, %p969_p10 }
 0x10f   : > { %p972_p3 = pnand %p971_p1, %p965_p9 }
 0x111   : > { %975 = shalt.err (!%p972_p3)
}
 0x112   : > { %818 = dma.vmem_to_hbm [thread:$0]  (%p1646_p11), %s1580_s13, 3072, %s1578_s27, %s610_s12, %s1042_s8, %s1042_s8, %s1043_s11  }
 0x113 PF: > { %p833_p5 = scmp.ge.s32.totalorder %s1034_s20, 2  ;;  %s660_s6 = sand.u32 1, %s1014_s15  }
 0x114   : > { %p1647_p6 = scmp.ne.s32.totalorder %s1643_s30, 0  ;;  %s661_s25 = scalar_lea.sflag [#allocation4], %s660_s6 }
 0x116   : > { %p826_p7 = pnand %p833_p5, %p1647_p6 }
 0x118   : > { %1005 = dma.done.wait (!%p826_p7), %s661_s25, 3072  }
 0x119   : > { %1007 = vsyncadd (!%p826_p7), %s661_s25, 4294964224  ;;  %s670_s28 = scalar_lea.sflag [#allocation7], %s660_s6 }
 0x11a   : > { %1009 = dma.done.wait (!%p826_p7), %s670_s28, 3072  }
 0x11b   : > { %1011 = vsyncadd (!%p826_p7), %s670_s28, 4294964224  ;;  %s24_s20 = sadd.s32 1, %s1034_s20   ;;  %s1648_s15 = smov %s1018_s16 }
 0x11c   : > { %p21_p0 = scmp.ge.s32.totalorder %s24_s20, 8   ;;  %s1649_s16 = smov %s1022_s17 }
 0x11d   : > { %s1650_s17 = smov %s1126_s29  ;;  %s1651_s18 = smov %s1030_s19 }
 0x11e   : > { %s1652_s19 = smov %s1654_s23  ;;  %23 = sbr.rel (!%p21_p0) target bundleno = 8 (0x8), region = 100 }
 0x125   :  { %675 = vsyncpa [#allocation3], 1 }
 0x126   :  { %677 = vsyncpa [#allocation3 + $0x1], 1 }
 0x127   :  { %678 = vsyncpa [#allocation4], 1 }
 0x128   :  { %680 = vsyncpa [#allocation4 + $0x1], 1 }
 0x129   :  { %681 = vsyncpa [#allocation7], 1 }
 0x12a   :  { %683 = vsyncpa [#allocation7 + $0x1], 1 }

</bundles_post_ra>
